<compile_context>
chip_gen: v6e
topology: v6e:2x2x1
jax: 0.10.0
libtpu: 0.0.40
codegen_flags: <defaults>
</compile_context>

<pallas_src>
import functools
import numpy as np

import jax
import jax.numpy as jnp
from jax.experimental import pallas as pl
from jax.experimental.pallas import tpu as pltpu


# ----------------------------------------------------------------------------
# Parameter construction (mirrors FourierFeatureIPE.__init__ with fourfeat=True)
# ----------------------------------------------------------------------------
def make_feature_matrix(key, num_dims_to_encode, max_deg, num_fourier_features,
                        dtype=jnp.float32):
    k1, k2 = jax.random.split(key)
    dirs = jax.random.normal(k1, (num_dims_to_encode, num_fourier_features),
                             dtype=jnp.float32)
    dirs = dirs / jnp.linalg.norm(dirs, axis=-1, keepdims=True)            # F.normalize(dim=-1)
    rads = 2.0 ** (max_deg * jax.random.uniform(k2, (num_fourier_features,),
                                                dtype=jnp.float32))
    fm = (rads * dirs).astype(jnp.int32)                                   # .long() truncation
    return fm.astype(dtype)                                                # .type(dtype)


# ----------------------------------------------------------------------------
# Pallas kernels
# ----------------------------------------------------------------------------
def _ff_ipe_kernel(x_ref, fm2_ref, phase_ref, decay_ref, o_ref):
    # x: (TN, D), fm2: (D, 2F), phase/decay: (1, 2F) resident, o: (TN, 2F)
    x_proj = jnp.dot(x_ref[...], fm2_ref[...], preferred_element_type=jnp.float32)
    out = decay_ref[...] * jnp.sin(x_proj + phase_ref[...])   # one full-lane EUP pass
    o_ref[...] = out.astype(o_ref.dtype)


def _ff_ipe_kernel_extra(x_ref, fm2_ref, phase_ref, decay_ref, xe_ref, o_ref, *, two_f):
    # Same as above but with x_extra pass-through fused into o[:, 2F:2F+E].
    x_proj = jnp.dot(x_ref[...], fm2_ref[...], preferred_element_type=jnp.float32)
    out = decay_ref[...] * jnp.sin(x_proj + phase_ref[...])
    o_ref[:, :two_f] = out.astype(o_ref.dtype)
    o_ref[:, two_f:] = xe_ref[...].astype(o_ref.dtype)


def _round_up(a, b):
    return (a + b - 1) // b * b


# ----------------------------------------------------------------------------
# Wrapper
# ----------------------------------------------------------------------------
def fourier_feature_ipe(x, fm, cov=None, decayscale=1.0, *, tile_n=1024):
    """Forward pass of FourierFeatureIPE using a Pallas TPU kernel.

    x   : (..., C) float32, C >= D where fm is (D, F)
    fm  : (D, F) float32 feature matrix (buffer `self.fm`)
    cov : None or scalar (python float or traced) -- scalar-cov IPE branch
    """
    D, F = fm.shape
    two_f = 2 * F

    x_enc = x[..., :D]
    E = x.shape[-1] - D
    x_extra = x[..., D:] if E > 0 else None

    lead = x.shape[:-1]
    N = int(np.prod(lead)) if lead else 1
    xf = x_enc.reshape(N, D)
    xef = x_extra.reshape(N, E) if E > 0 else None

    # ---- grid-invariant constants, hoisted out of the kernel ----------------
    fm32 = fm.astype(jnp.float32)
    fm2 = jnp.concatenate([fm32, fm32], axis=1)                        # (D, 2F)
    # cos(t) = sin(t + pi/2): phase for the first F (cos) lanes, 0 for the sin lanes.
    phase = jnp.concatenate([jnp.full((F,), jnp.float32(np.pi / 2)),
                             jnp.zeros((F,), jnp.float32)])[None, :]   # (1, 2F)
    if cov is None:
        decay2 = jnp.ones((1, two_f), jnp.float32)
    else:
        cov_diag_proj = jnp.asarray(cov, jnp.float32) * jnp.sum(fm32 * fm32, axis=0)  # (F,)
        decay = jnp.exp(-0.5 * cov_diag_proj *
                        jnp.asarray(decayscale, jnp.float32) ** 2)                    # (F,)
        decay2 = jnp.concatenate([decay, decay])[None, :]                             # (1, 2F)

    # ---- row tiling: large tiles amortize per-step overhead; pad ragged N ---
    tile_n = _round_up(max(8, min(int(tile_n), _round_up(N, 8))), 8)
    n_pad = _round_up(N, tile_n)
    if n_pad != N:
        xf = jnp.pad(xf, ((0, n_pad - N), (0, 0)))
        if xef is not None:
            xef = jnp.pad(xef, ((0, n_pad - N), (0, 0)))
    grid = (n_pad // tile_n,)

    in_specs = [
        pl.BlockSpec((tile_n, D), lambda i: (i, 0)),       # x rows (tiled)
        pl.BlockSpec((D, two_f), lambda i: (0, 0)),        # fm2, fully resident
        pl.BlockSpec((1, two_f), lambda i: (0, 0)),        # phase, resident
        pl.BlockSpec((1, two_f), lambda i: (0, 0)),        # decay, resident
    ]
    args = [xf, fm2, phase, decay2]

    if E > 0:
        in_specs.append(pl.BlockSpec((tile_n, E), lambda i: (i, 0)))   # x_extra rows
        args.append(xef)
        kernel = functools.partial(_ff_ipe_kernel_extra, two_f=two_f)
        out_cols = two_f + E
    else:
        kernel = _ff_ipe_kernel
        out_cols = two_f

    out_flat = pl.pallas_call(
        kernel,
        out_shape=jax.ShapeDtypeStruct((n_pad, out_cols), x.dtype),
        grid_spec=pltpu.PrefetchScalarGridSpec(
            num_scalar_prefetch=0,
            grid=grid,
            in_specs=in_specs,
            out_specs=pl.BlockSpec((tile_n, out_cols), lambda i: (i, 0)),
        ),
        compiler_params=pltpu.CompilerParams(
            dimension_semantics=("parallel",)),
    )(*args)

    if n_pad != N:
        out_flat = out_flat[:N]
    return out_flat.reshape(*lead, out_cols)


# ----------------------------------------------------------------------------
# Pure-JAX reference (mirrors the PyTorch forward exactly)
# ----------------------------------------------------------------------------
def fourier_feature_ipe_ref(x, fm, cov=None, decayscale=1.0):
    D, F = fm.shape
    x_enc = x[..., :D]
    x_extra = x[..., D:] if x.shape[-1] > D else None
    x_proj = x_enc @ fm
    if cov is not None:
        cov_diag_proj = cov * jnp.sum(fm * fm, axis=-2)
        decay = jnp.exp(-0.5 * cov_diag_proj * decayscale ** 2)
    else:
        decay = 1.0
    parts = [decay * jnp.cos(x_proj), decay * jnp.sin(x_proj)]
    if x_extra is not None:
        parts.append(x_extra)
    return jnp.concatenate(parts, axis=-1)


if __name__ == "__main__":
    # Module config: num_dims_to_encode=3, max_deg=4, ipe=True, fourfeat=True, F=64
    D, MAX_DEG, F = 3, 4, 64
    COV, DECAYSCALE = 0.1, 1.0

    key = jax.random.PRNGKey(0)
    k_fm, k_x1, k_x2, k_x3 = jax.random.split(key, 4)

    fm = make_feature_matrix(k_fm, D, MAX_DEG, F)                 # (3, 64) float32

    # Tolerance note: cos(t) == sin(t + pi/2) fusion differs from jnp.cos by a few ulp.
    RTOL, ATOL = 1e-4, 1e-4

    # 1) batch=2, seq=8, channels=5 (3 encoded + 2 extra pass-through), scalar cov
    x1 = jax.random.normal(k_x1, (2, 8, 5), dtype=jnp.float32)
    out1 = jax.block_until_ready(fourier_feature_ipe(x1, fm, cov=COV, decayscale=DECAYSCALE))
    ref1 = fourier_feature_ipe_ref(x1, fm, cov=COV, decayscale=DECAYSCALE)
    assert out1.shape == (2, 8, 2 * F + 2), out1.shape
    np.testing.assert_allclose(np.asarray(out1), np.asarray(ref1), rtol=RTOL, atol=ATOL)

    # 2) ragged N (201 rows) with a small tile -> multi-step grid + padding path, cov=None
    x2 = jax.random.normal(k_x2, (3, 67, 5), dtype=jnp.float32)
    out2 = jax.block_until_ready(fourier_feature_ipe(x2, fm, cov=None, tile_n=64))
    ref2 = fourier_feature_ipe_ref(x2, fm, cov=None)
    assert out2.shape == (3, 67, 2 * F + 2), out2.shape
    np.testing.assert_allclose(np.asarray(out2), np.asarray(ref2), rtol=RTOL, atol=ATOL)

    # 3) no extra channels (C == D), scalar cov
    x3 = jax.random.normal(k_x3, (2, 8, 3), dtype=jnp.float32)
    out3 = jax.block_until_ready(fourier_feature_ipe(x3, fm, cov=COV, decayscale=DECAYSCALE))
    ref3 = fourier_feature_ipe_ref(x3, fm, cov=COV, decayscale=DECAYSCALE)
    assert out3.shape == (2, 8, 2 * F), out3.shape
    np.testing.assert_allclose(np.asarray(out3), np.asarray(ref3), rtol=RTOL, atol=ATOL)

    print("KERNEL_OK")
</pallas_src>

<mosaic_0001>
module attributes {stable_mosaic.version = 11 : i64} {
  func.func @_ff_ipe_kernel_extra(%arg0: i32, %arg1: memref<16x3xf32, #tpu.memory_space<vmem>>, %arg2: memref<3x128xf32, #tpu.memory_space<vmem>>, %arg3: memref<1x128xf32, #tpu.memory_space<vmem>>, %arg4: memref<1x128xf32, #tpu.memory_space<vmem>>, %arg5: memref<16x2xf32, #tpu.memory_space<vmem>>, %arg6: memref<16x130xf32, #tpu.memory_space<vmem>>) attributes {dimension_semantics = [#tpu.dimension_semantics<parallel>], iteration_bounds = array<i64: 1>, scalar_prefetch = 0 : i64, scratch_operands = 0 : i64, tpu.core_type = #tpu.core_type<tc>, window_params = [{transform_indices = @transform_0, window_bounds = array<i64: 16, 3>}, {pipeline_mode = #tpu.pipeline_mode<synchronous>, transform_indices = @transform_1, window_bounds = array<i64: 3, 128>}, {pipeline_mode = #tpu.pipeline_mode<synchronous>, transform_indices = @transform_2, window_bounds = array<i64: 1, 128>}, {pipeline_mode = #tpu.pipeline_mode<synchronous>, transform_indices = @transform_3, window_bounds = array<i64: 1, 128>}, {transform_indices = @transform_4, window_bounds = array<i64: 16, 2>}, {transform_indices = @transform_5, window_bounds = array<i64: 16, 130>}]} {
    %c0 = arith.constant 0 : index
    %c0_0 = arith.constant 0 : index
    %0 = vector.load %arg1[%c0, %c0_0] : memref<16x3xf32, #tpu.memory_space<vmem>>, vector<16x3xf32>
    %c0_1 = arith.constant 0 : index
    %c0_2 = arith.constant 0 : index
    %1 = vector.load %arg2[%c0_1, %c0_2] : memref<3x128xf32, #tpu.memory_space<vmem>>, vector<3x128xf32>
    %cst = arith.constant dense<0.000000e+00> : vector<16x128xf32>
    %2 = tpu.matmul %0, %1, %cst {dimension_numbers = #tpu.dot_dimension_numbers<[1], [0], [0], [1], [0, 0, 1, 1], [], []>} : vector<16x3xf32>, vector<3x128xf32>, vector<16x128xf32> -> vector<16x128xf32>
    %c0_3 = arith.constant 0 : index
    %c0_4 = arith.constant 0 : index
    %3 = vector.load %arg4[%c0_3, %c0_4] : memref<1x128xf32, #tpu.memory_space<vmem>>, vector<1x128xf32>
    %c0_5 = arith.constant 0 : index
    %c0_6 = arith.constant 0 : index
    %4 = vector.load %arg3[%c0_5, %c0_6] : memref<1x128xf32, #tpu.memory_space<vmem>>, vector<1x128xf32>
    %5 = vector.broadcast %4 : vector<1x128xf32> to vector<16x128xf32>
    %6 = arith.addf %2, %5 : vector<16x128xf32>
    %7 = math.sin %6 : vector<16x128xf32>
    %8 = vector.broadcast %3 : vector<1x128xf32> to vector<16x128xf32>
    %9 = arith.mulf %8, %7 : vector<16x128xf32>
    %c0_7 = arith.constant 0 : index
    %c0_8 = arith.constant 0 : index
    %10 = vector.load %arg6[%c0_7, %c0_8] : memref<16x130xf32, #tpu.memory_space<vmem>>, vector<16x128xf32>
    tpu.vector_store %arg6[%c0_7, %c0_8], %9 {strides = array<i32>} : memref<16x130xf32, #tpu.memory_space<vmem>>, vector<16x128xf32>,
    %c0_9 = arith.constant 0 : index
    %c0_10 = arith.constant 0 : index
    %11 = vector.load %arg5[%c0_9, %c0_10] : memref<16x2xf32, #tpu.memory_space<vmem>>, vector<16x2xf32>
    %c0_11 = arith.constant 0 : index
    %c128 = arith.constant 128 : index
    %12 = vector.load %arg6[%c0_11, %c128] : memref<16x130xf32, #tpu.memory_space<vmem>>, vector<16x2xf32>
    tpu.vector_store %arg6[%c0_11, %c128], %11 {strides = array<i32>} : memref<16x130xf32, #tpu.memory_space<vmem>>, vector<16x2xf32>,
    return
  }
  func.func @transform_0(%arg0: i32) -> (i32, i32) {
    %c0_i32 = arith.constant 0 : i32
    %c0_i32_0 = arith.constant 0 : i32
    return %arg0, %c0_i32 : i32, i32
  }
  func.func @transform_1(%arg0: i32) -> (i32, i32) {
    %c0_i32 = arith.constant 0 : i32
    %c0_i32_0 = arith.constant 0 : i32
    %c0_i32_1 = arith.constant 0 : i32
    return %c0_i32, %c0_i32_0 : i32, i32
  }
  func.func @transform_2(%arg0: i32) -> (i32, i32) {
    %c0_i32 = arith.constant 0 : i32
    %c0_i32_0 = arith.constant 0 : i32
    %c0_i32_1 = arith.constant 0 : i32
    return %c0_i32, %c0_i32_0 : i32, i32
  }
  func.func @transform_3(%arg0: i32) -> (i32, i32) {
    %c0_i32 = arith.constant 0 : i32
    %c0_i32_0 = arith.constant 0 : i32
    %c0_i32_1 = arith.constant 0 : i32
    return %c0_i32, %c0_i32_0 : i32, i32
  }
  func.func @transform_4(%arg0: i32) -> (i32, i32) {
    %c0_i32 = arith.constant 0 : i32
    %c0_i32_0 = arith.constant 0 : i32
    return %arg0, %c0_i32 : i32, i32
  }
  func.func @transform_5(%arg0: i32) -> (i32, i32) {
    %c0_i32 = arith.constant 0 : i32
    %c0_i32_0 = arith.constant 0 : i32
    return %arg0, %c0_i32 : i32, i32
  }
}

</mosaic_0001>

<bundles_post_ra>
// kernel: tpu_custom_call.1
= control target key start
LH: loop header
LB: loop body
LE: loop exit
PB: predicated region body
PF: predicated region fallthrough
CT: control target
= control target key end

     0   :  { %vm39_vm0 = vcmask 1042432   ;;  %vm32_vm1 = vcmask 23552   ;;  %s557_s0 = inlined_call_operand.vmem [shape: f32[16,3], index: 0, kind: input, shape index: {}]   ;;  %s558_s1 = inlined_call_operand.vmem [shape: f32[3,128], index: 1, kind: input, shape index: {}]   ;;  %s559_s2 = inlined_call_operand.vmem [shape: f32[1,128], index: 2, kind: input, shape index: {}]   ;;  %s560_s3 = inlined_call_operand.vmem [shape: f32[1,128], index: 3, kind: input, shape index: {}]   ;;  %s561_s4 = inlined_call_operand.vmem [shape: f32[16,2], index: 4, kind: input, shape index: {}]   ;;  %s562_s5 = inlined_call_operand.hbm [shape: f32[16,130], index: 5, kind: output, shape index: {}]  }
   0x1   :  { %v23_v0 = vld [vmem:[%s558_s1] sm:$0x7]  ;;  %v22_v2 = vld [vmem:[%s557_s0 + $0x8] sm:$0xff] }
   0x2   :  { %v21_v1 = vld [vmem:[%s557_s0] sm:$0xff]  ;;  %373 = vmatprep.subr.msk.mxu0 %vm39_vm0, %v23_v0 }
   0x3   :  { %375 = vmatprep.mubr.msk.f32.mxu0 %vm32_vm1, %v21_v1 }
   0x4   :  { %10 = vsyncpa [#allocation3], 0  ;;  %374 = vmatpush3.msk.msra.mxu0 %vm39_vm0, %v23_v0  ;;  %v336_v3 = vld [vmem:[%s561_s4] sm:$0xff]  ;;  %v337_v4 = vld [vmem:[%s561_s4 + $0x8] sm:$0xff]  ;;  %vm338_vm2 = vcmask 15360  }
   0x5   :  { %376 = vmatmul.mubr.msk.f32.vlgmr.msra.gmra.mxu0 %vm32_vm1, %v22_v2  ;;  %339 = vst.msk [vmem:[#allocation2 + $0x8] sm:$0xff] %vm338_vm2, %v336_v3  ;;  %340 = vst.msk [vmem:[#allocation2 + $0x18] sm:$0xff] %vm338_vm2, %v337_v4  ;;  %v357_v5 = vld [vmem:[%s559_s2] ss:$0 sm:$0xff]  ;;  %v425_v28 = vmov 683565275  }
   0x6   :  { %v426_v31 = vmov 2475754826   ;;  %v427_v33 = vmov 2131351028   ;;  %v428_v35 = vmov 2102212464  }
   0x7   :  { %v429_v37 = vmov 920167782   ;;  %v430_v44 = vmov 1326507024  }
  0xc5   :  { %v377_v6 = vpop.f32.mrf.mxu0 }
  0xc6   :  { %v482_v7 = vadd.f32 %v377_v6, %v357_v5 }
  0xc7   :  { %v109_v8 = vpop.f32.mrf.mxu0 }
  0xc8   :  { %v222_v9 = vand.u32 2147483647, %v482_v7  ;;  %v225_v10 = vand.u32 2139095040, %v482_v7  ;;  %v486_v11 = vadd.f32 %v357_v5, %v109_v8  ;;  %vm224_vm1 = vcmp.lt.s32.totalorder %v482_v7, 0 }
  0xca   :  { %v226_v12 = vshrl.u32 %v225_v10, 23  ;;  %v229_v13 = vand.u32 8388607, %v222_v9  ;;  %v121_v14 = vand.u32 2139095040, %v486_v11  ;;  %v118_v16 = vand.u32 2147483647, %v486_v11 }
  0xcb   :  { %vm223_vm2 = vcmp.le.f32.partialorder %v222_v9, 0.7853982 }
  0xcc   :  { %v365_v15 = vadd.s32 4294967169, %v226_v12  ;;  %v122_v17 = vshrl.u32 %v121_v14, 23  ;;  %v230_v19 = vor.u32 8388608, %v229_v13  ;;  %v125_v21 = vand.u32 8388607, %v118_v16 }
  0xce   :  { %v232_v18 = vadd.s32 1, %v365_v15  ;;  %v361_v20 = vadd.s32 4294967169, %v122_v17  ;;  %v494_v26 = vshll.u32 %v230_v19, 8  ;;  %v126_v30 = vor.u32 8388608, %v125_v21 }
  0xd0   :  { %vm233_vm3 = vcmp.gt.s32.totalorder %v232_v18, 0  ;;  %v128_v23 = vadd.s32 1, %v361_v20  ;;  %v166_v63 = vshll.u32 %v126_v30, 8 }
  0xd1   :  { %v234_v22 = vsel %vm233_vm3, %v232_v18, 0  ;;  %vm120_vm3 = vcmp.lt.s32.totalorder %v486_v11, 0 }
  0xd2   :  { %v235_v24 = vshrl.u32 %v234_v22, 5  ;;  %v236_v25 = vand.u32 31, %v234_v22  ;;  %vm129_vm4 = vcmp.gt.s32.totalorder %v128_v23, 0 }
  0xd3   :  { %v130_v49 = vsel %vm129_vm4, %v128_v23, 0  ;;  %vm540_vm4 = vcmp.le.f32.partialorder %v118_v16, 0.7853982 }
  0xd4   :  { %v237_v27 = vsub.s32 32, %v236_v25  ;;  %v239_v29 = vshll.u32 %v425_v28, %v236_v25  ;;  %v242_v32 = vshll.u32 %v426_v31, %v236_v25  ;;  %v245_v34 = vshll.u32 %v427_v33, %v236_v25 }
  0xd5   :  { %v248_v36 = vshll.u32 %v428_v35, %v236_v25  ;;  %v251_v38 = vshll.u32 %v429_v37, %v236_v25  ;;  %vm254_vm5 = vcmp.lt.s32.totalorder %v235_v24, 1  ;;  %vm256_vm6 = vcmp.lt.s32.totalorder %v235_v24, 3 }
  0xd6   :  { %v240_v39 = vshrl.u32 %v426_v31, %v237_v27  ;;  %v243_v40 = vshrl.u32 %v427_v33, %v237_v27  ;;  %v246_v41 = vshrl.u32 %v428_v35, %v237_v27  ;;  %v238_v42 = vshrl.u32 %v425_v28, %v237_v27 }
  0xd7   :  { %v249_v43 = vshrl.u32 %v429_v37, %v237_v27  ;;  %v252_v45 = vshrl.u32 %v430_v44, %v237_v27  ;;  %vm257_vm7 = vcmp.lt.s32.totalorder %v235_v24, 4  ;;  %v132_v52 = vand.u32 31, %v130_v49 }
  0xd8   :  { %v241_v46 = vor.u32 %v240_v39, %v239_v29  ;;  %v244_v47 = vor.u32 %v243_v40, %v242_v32  ;;  %v247_v48 = vor.u32 %v246_v41, %v245_v34  ;;  %vm255_vm8 = vcmp.lt.s32.totalorder %v235_v24, 2 }
  0xd9   :  { %v250_v50 = vor.u32 %v249_v43, %v248_v36  ;;  %v253_v51 = vor.u32 %v252_v45, %v251_v38  ;;  %v133_v60 = vsub.s32 32, %v132_v52  ;;  %v131_v3 = vshrl.u32 %v130_v49, 5 }
  0xda   :  { %v258_v53 = vsel %vm254_vm5, %v238_v42, %v241_v46  ;;  %v259_v54 = vsel %vm257_vm7, %v247_v48, 2102212464  ;;  %v262_v55 = vsel %vm254_vm5, %v241_v46, %v244_v47  ;;  %v266_v56 = vsel %vm254_vm5, %v244_v47, %v247_v48 }
  0xdb   :  { %v260_v57 = vsel %vm256_vm6, %v244_v47, %v259_v54  ;;  %v263_v58 = vsel %vm257_vm7, %v250_v50, 920167782  ;;  %v267_v59 = vsel %vm257_vm7, %v253_v51, 1326507024  ;;  %v135_v10 = vshll.u32 %v425_v28, %v132_v52 }
  0xdc   :  { %v264_v61 = vsel %vm256_vm6, %v247_v48, %v263_v58  ;;  %v268_v62 = vsel %vm256_vm6, %v250_v50, %v267_v59  ;;  %v261_v0 = vsel %vm255_vm8, %v258_v53, %v260_v57  ;;  %v136_v12 = vshrl.u32 %v426_v31, %v133_v60 }
  0xdd   :  { %v265_v1 = vsel %vm255_vm8, %v262_v55, %v264_v61  ;;  %v269_v2 = vsel %vm255_vm8, %v266_v56, %v268_v62  ;;  %v138_v13 = vshll.u32 %v426_v31, %v132_v52  ;;  %v139_v14 = vshrl.u32 %v427_v33, %v133_v60 }
  0xde   :  { %v506_v4 = vmul.u32.u64.low %v494_v26, %v269_v2  ;;  %v507_v5 = vmul.u32.u64.high %v494_v26, %v269_v2, %v506_v4  ;;  %v510_v6 = vmul.u32.u64.low %v494_v26, %v265_v1  ;;  %v511_v8 = vmul.u32.u64.high %v494_v26, %v265_v1, %v510_v6 }
  0xdf   :  { %v141_v15 = vshll.u32 %v427_v33, %v132_v52  ;;  %v142_v17 = vshrl.u32 %v428_v35, %v133_v60  ;;  %v144_v18 = vshll.u32 %v428_v35, %v132_v52  ;;  %v145_v19 = vshrl.u32 %v429_v37, %v133_v60 }
  0xe0   :  { %v137_v20 = vor.u32 %v136_v12, %v135_v10  ;;  %v140_v21 = vor.u32 %v139_v14, %v138_v13  ;;  %v147_v22 = vshll.u32 %v429_v37, %v132_v52  ;;  %v148_v23 = vshrl.u32 %v430_v44, %v133_v60 }
  0xe1   :  { %v277_v24 = vmul.u32 %v494_v26, %v261_v0  ;;  %vm279_vm9 = vc.u32 %v507_v5, %v510_v6  ;;  %v280_v25 = vadd.s32 1, %v511_v8  ;;  %v143_v27 = vor.u32 %v142_v17, %v141_v15 }
  0xe2   :  { %v134_v29 = vshrl.u32 %v425_v28, %v133_v60  ;;  %v146_v30 = vor.u32 %v145_v19, %v144_v18  ;;  %v149_v31 = vor.u32 %v148_v23, %v147_v22  ;;  %vm150_vm10 = vcmp.lt.s32.totalorder %v131_v3, 1 }
  0xe3   :  { %v281_v32 = vsel %vm279_vm9, %v280_v25, %v511_v8  ;;  %vm152_vm11 = vcmp.lt.s32.totalorder %v131_v3, 3  ;;  %vm153_vm12 = vcmp.lt.s32.totalorder %v131_v3, 4  ;;  %v158_v33 = vsel %vm150_vm10, %v137_v20, %v140_v21 }
  0xe4   :  { %v282_v34 = vadd.s32 %v281_v32, %v277_v24  ;;  %v155_v35 = vsel %vm153_vm12, %v143_v27, 2102212464  ;;  %v159_v36 = vsel %vm153_vm12, %v146_v30, 920167782  ;;  %v162_v26 = vsel %vm150_vm10, %v140_v21, %v143_v27 }
  0xe5   :  { %vm151_vm13 = vcmp.lt.s32.totalorder %v131_v3, 2  ;;  %v154_v37 = vsel %vm150_vm10, %v134_v29, %v137_v20  ;;  %v160_v38 = vsel %vm152_vm11, %v143_v27, %v159_v36  ;;  %v163_v39 = vsel %vm153_vm12, %v149_v31, 1326507024 }
  0xe6   :  { %v283_v40 = vadd.s32 536870912, %v282_v34  ;;  %v156_v41 = vsel %vm152_vm11, %v140_v21, %v155_v35  ;;  %v161_v42 = vsel %vm151_vm13, %v158_v33, %v160_v38  ;;  %v164_v28 = vsel %vm152_vm11, %v146_v30, %v163_v39 }
  0xe7   :  { %v165_v43 = vsel %vm151_vm13, %v162_v26, %v164_v28  ;;  %v521_v44 = vmul.u32.u64.low %v166_v63, %v161_v42  ;;  %v522_v45 = vmul.u32.u64.high %v166_v63, %v161_v42, %v521_v44  ;;  %v157_v49 = vsel %vm151_vm13, %v154_v37, %v156_v41 }
  0xe8   :  { %v284_v46 = vshrl.u32 %v283_v40, 30  ;;  %v524_v47 = vmul.u32.u64.low %v166_v63, %v165_v43  ;;  %v525_v48 = vmul.u32.u64.high %v166_v63, %v165_v43, %v524_v47  ;;  %v173_v53 = vmul.u32 %v166_v63, %v157_v49 }
  0xe9   :  { %v176_v51 = vadd.s32 1, %v522_v45  ;;  %v278_v2 = vadd.s32 %v510_v6, %v507_v5  ;;  %vm314_vm8 = vweird.f32 %v482_v7  ;;  %vm210_vm12 = vweird.f32 %v486_v11 }
  0xea   :  { %v285_v50 = vshll.u32 %v284_v46, 30  ;;  %vm175_vm14 = vc.u32 %v525_v48, %v521_v44  ;;  %v174_v24 = vadd.s32 %v521_v44, %v525_v48  ;;  %v308_v27 = vsub.s32 4, %v284_v46 }
  0xeb   :  { %v177_v54 = vsel %vm175_vm14, %v176_v51, %v522_v45 }
  0xec   :  { %v286_v52 = vsub.s32 %v282_v34, %v285_v50  ;;  %v178_v56 = vadd.s32 %v177_v54, %v173_v53  ;;  %v309_v36 = vsel %vm224_vm1, %v308_v27, %v284_v46 }
  0xed   :  { %v311_v39 = vsel %vm223_vm2, 0, %v309_v36 }
  0xee   :  { %v288_v55 = vsub.s32 0, %v286_v52  ;;  %v179_v58 = vadd.s32 536870912, %v178_v56  ;;  %v315_v41 = vadd.s32 3, %v311_v39 }
  0xf0   :  { %v366_v57 = vmin.u32 %v288_v55, %v286_v52  ;;  %v180_v60 = vshrl.u32 %v179_v58, 30  ;;  %v316_v45 = vand.u32 3, %v315_v41 }
  0xf2   :  { %v290_v59 = vclz %v366_v57  ;;  %v181_v62 = vshll.u32 %v180_v60, 30  ;;  %v204_v28 = vsub.s32 4, %v180_v60  ;;  %vm321_vm5 = vcmp.eq.s32.totalorder %v316_v45, 2 }
  0xf3   :  { %vm318_vm6 = vcmp.eq.s32.totalorder %v316_v45, 0  ;;  %vm317_vm7 = vcmp.lt.s32.totalorder %v316_v45, 2 }
  0xf4   :  { %v367_v61 = vadd.s32 4294967294, %v290_v59  ;;  %v182_v1 = vsub.s32 %v178_v56, %v181_v62  ;;  %v205_v46 = vsel %vm120_vm3, %v204_v28, %v180_v60 }
  0xf5   :  { %v207_v16 = vsel %vm540_vm4, 0, %v205_v46 }
  0xf6   :  { %vm368_vm15 = vcmp.lt.s32.totalorder %v367_v61, 0  ;;  %v184_v4 = vsub.s32 0, %v182_v1  ;;  %v211_v55 = vadd.s32 3, %v207_v16 }
  0xf7   :  { %v293_v0 = vsel %vm368_vm15, 0, %v367_v61 }
  0xf8   :  { %v294_v3 = vsub.s32 32, %v293_v0  ;;  %v298_v63 = vsub.s32 4294967266, %v293_v0  ;;  %v295_v8 = vshll.u32 %v286_v52, %v293_v0  ;;  %v362_v13 = vmin.u32 %v184_v4, %v182_v1  ;;  %v369_v52 = vld [vmem:[%s560_s3] ss:$0 sm:$0xff]  ;;  %s431_s3 = smov [#allocation2]  }
  0xf9   :  { %v212_v58 = vand.u32 3, %v211_v55  ;;  %s346_s4 = sshll.u32 %s431_s3, 4  ;;  %s347_s4 = int_to_ptr.vmem [resolvable:$true] %s346_s4 }
  0xfa   :  { %v296_v10 = vshrl.u32 %v278_v2, %v294_v3  ;;  %v299_v12 = vadd.s32 127, %v298_v63  ;;  %v186_v17 = vclz %v362_v13  ;;  %s403_s29 = scalar_lea.vmem %s347_s4, 512  ;;  %p408_p1 = scmp.lt.s32.totalorder %s347_s4, %s347_s4 }
  0xfb   :  { %vm217_vm9 = vcmp.eq.s32.totalorder %v212_v58, 2  ;;  %vm214_vm10 = vcmp.eq.s32.totalorder %v212_v58, 0  ;;  %vm213_vm11 = vcmp.lt.s32.totalorder %v212_v58, 2  ;;  %p404_p0 = scmp.ne.s32.totalorder %s347_s4, %s403_s29  ;;  %p409_p2 = scmp.lt.s32.totalorder %s403_s29, %s403_s29 }
  0xfc   :  { %v297_v14 = vor.u32 %v296_v10, %v295_v8  ;;  %v300_v15 = vshll.u32 %v299_v12, 23  ;;  %v363_v19 = vadd.s32 4294967294, %v186_v17 }
  0xfd   :  { %p410_p3 = por %p409_p2, %p408_p1 }
  0xfe   :  { %v301_v18 = vor.u32 4788187, %v300_v15  ;;  %v304_v21 = vcvt.s32.f32 %v297_v14  ;;  %vm364_vm0 = vcmp.lt.s32.totalorder %v363_v19, 0 }
  0xff   :  { %v189_v23 = vsel %vm364_vm0, 0, %v363_v19  ;;  %p411_p4 = pnand %p410_p3, %p404_p0 }
 0x100   :  { %v302_v20 = vand.u32 2147483647, %v301_v18  ;;  %v190_v5 = vsub.s32 32, %v189_v23  ;;  %v194_v6 = vsub.s32 4294967266, %v189_v23  ;;  %v191_v29 = vshll.u32 %v182_v1, %v189_v23 }
 0x102   :  { %v305_v22 = vmul.f32 %v304_v21, %v302_v20  ;;  %v192_v30 = vshrl.u32 %v174_v24, %v190_v5  ;;  %v195_v31 = vadd.s32 127, %v194_v6 }
 0x104   :  { %v306_v25 = vxor.u32 2147483648, %v305_v22  ;;  %v193_v34 = vor.u32 %v192_v30, %v191_v29  ;;  %v196_v35 = vshll.u32 %v195_v31, 23 }
 0x106   :  { %v307_v32 = vsel %vm224_vm1, %v306_v25, %v305_v22  ;;  %v197_v26 = vor.u32 4788187, %v196_v35  ;;  %v200_v38 = vcvt.s32.f32 %v193_v34 }
 0x107   :  { %v310_v33 = vsel %vm223_vm2, %v482_v7, %v307_v32 }
 0x108   :  { %395 = vcosq.f32 %v310_v33  ;;  %v198_v37 = vand.u32 2147483647, %v197_v26 }
 0x109   :  { %397 = vsinq.f32 %v310_v33 }
 0x10a   :  { %v201_v40 = vmul.f32 %v200_v38, %v198_v37 }
 0x10c   :  { %v202_v42 = vxor.u32 2147483648, %v201_v40 }
 0x10e   :  { %v203_v43 = vsel %vm120_vm3, %v202_v42, %v201_v40 }
 0x10f   :  { %v206_v44 = vsel %vm540_vm4, %v486_v11, %v203_v43 }
 0x110   :  { %399 = vcosq.f32 %v206_v44 }
 0x111   :  { %401 = vsinq.f32 %v206_v44 }
 0x115   :  { %v396_v47 = vpop.eup %395 }
 0x116   :  { %v398_v48 = vpop.eup %397  ;;  %v322_v49 = vxor.u32 2147483648, %v396_v47 }
 0x117   :  { %v319_v50 = vxor.u32 2147483648, %v398_v48 }
 0x118   :  { %v323_v51 = vsel %vm321_vm5, %v322_v49, %v398_v48 }
 0x119   :  { %v320_v53 = vsel %vm318_vm6, %v396_v47, %v319_v50 }
 0x11a   :  { %v324_v54 = vsel %vm317_vm7, %v320_v53, %v323_v51 }
 0x11b   :  { %v325_v56 = vsel %vm314_vm8, nan, %v324_v54 }
 0x11c   :  { %v333_v57 = vmul.f32 %v369_v52, %v325_v56 }
 0x11d   :  { %v400_v59 = vpop.eup %399 }
 0x11e   :  { %335 = vst [vmem:[#allocation2 + $0x10] sm:$0xff] %v333_v57  ;;  %v402_v60 = vpop.eup %401  ;;  %v218_v61 = vxor.u32 2147483648, %v400_v59 }
 0x11f   :  { %v215_v62 = vxor.u32 2147483648, %v402_v60 }
 0x120   :  { %v219_v0 = vsel %vm217_vm9, %v218_v61, %v402_v60 }
 0x121   :  { %v216_v1 = vsel %vm214_vm10, %v400_v59, %v215_v62 }
 0x122   :  { %v220_v7 = vsel %vm213_vm11, %v216_v1, %v219_v0 }
 0x123   :  { %v221_v2 = vsel %vm210_vm12, nan, %v220_v7 }
 0x124   :  { %v332_v3 = vmul.f32 %v369_v52, %v221_v2 }
 0x126   :  { %334 = vst [vmem:[#allocation2] sm:$0xff] %v332_v3 }
 0x127   :  { %414 = shalt.err (!%p411_p4)
}
 0x128   :  { %s432_s30 = smov 256   ;;  %s433_s6 = smov 16  }
 0x129   :  { %352 = dma.vmem_to_hbm [thread:$0]  %s347_s4, 512, %s562_s5, [#allocation3], %s432_s30, %s432_s30, %s433_s6  }
 0x12a   :  { %423 = dma.done.wait [#allocation3], 512  }
 0x12b   :  { %424 = vsyncadd [#allocation3], 4294966784 }
 0x12c   :  { %356 = vsyncpa [#allocation3], 1 }

</bundles_post_ra>
